<compile_context>
chip_gen: v7x
topology: tpu7x:2x2x1
jax: 0.10.0
libtpu: 0.0.40
codegen_flags: <defaults>
</compile_context>

<pallas_src>
import jax
import jax.numpy as jnp
from jax.experimental import pallas as pl
from jax.experimental.pallas import tpu as pltpu


def _round_up(v, m):
    return ((v + m - 1) // m) * m


def _vmem_capacity_bytes():
    try:
        return int(pltpu.get_tpu_info().vmem_capacity_bytes)
    except Exception:
        return 64 * 1024 * 1024  # conservative default: v7x per-core VMEM


def _vmem_estimate(tm, tk, to, b8, xbytes, wbytes, obytes, use_acc):
    return (2 * tm * tk * xbytes        # x double buffer
            + 2 * tk * to * wbytes      # W double buffer
            + 2 * tm * b8 * 4           # one-hot double buffer (f32)
            + 2 * b8 * to * 4           # correction double buffer (f32)
            + 2 * tm * to * obytes      # output double buffer
            + (tm * to * 4 if use_acc else 0))


def _select_tiles(m, d, op, b8, xbytes, wbytes, obytes, budget, use_acc):
    # M tile: folded B*N rows; aim for full MXU rows (256 on v6e/v7x, also
    # fine on v5e as two MXU passes).
    tm_cands = (m,) if m <= 256 else (256, 128, 64)
    # K tile: full extent when in_dim is not 128-aligned (avoids padding x in
    # HBM); otherwise large 128-aligned divisors, including D itself so
    # awkward sizes (e.g. 384) do not degenerate to 128.
    if d % 128 == 0:
        tk_cands = [d] + [c for c in (2048, 1024, 512, 256, 128)
                          if c < d and d % c == 0]
    else:
        tk_cands = [d]
    # O tile: padded out_dim itself, else large 128-aligned divisors.
    to_cands = [op] + [c for c in (1024, 512, 256, 128) if c < op and op % c == 0]

    for tm in tm_cands:               # shrink the M tile last
        for to in to_cands:           # then the O tile
            for tk in tk_cands:       # shrink the K tile first
                if _vmem_estimate(tm, tk, to, b8, xbytes, wbytes, obytes,
                                  use_acc) <= budget:
                    return tm, tk, to
    return tm_cands[-1], tk_cands[-1], to_cands[-1]   # best-effort fallback


def _pe1_accumulate(x_ref, w_ref, oh_ref, corr_ref, acc_ref):
    """Shared body: acc = onehot @ corr (at k==0), then acc += x @ W."""
    k = pl.program_id(2)

    @pl.when(k == 0)
    def _init():
        # Per-batch correction (bias - mean_n(x_b) @ W) broadcast to rows via a
        # tiny one-hot MXU matmul: (TM, B8) @ (B8, TO).
        acc_ref[...] = jnp.dot(oh_ref[...], corr_ref[...],
                               preferred_element_type=jnp.float32)

    # Main MXU work: accumulate x @ W in f32.
    acc_ref[...] += jnp.dot(x_ref[...], w_ref[...],
                            preferred_element_type=jnp.float32)


def _pe1_kernel_inplace(x_ref, w_ref, oh_ref, corr_ref, o_ref):
    # f32 output: accumulate straight into the resident output block (saves the
    # acc scratch and an extra VMEM round-trip; matters on v7x's 64 MiB VMEM).
    _pe1_accumulate(x_ref, w_ref, oh_ref, corr_ref, o_ref)


def _pe1_kernel_cast(x_ref, w_ref, oh_ref, corr_ref, o_ref, acc_ref):
    _pe1_accumulate(x_ref, w_ref, oh_ref, corr_ref, acc_ref)

    @pl.when(pl.program_id(2) == pl.num_programs(2) - 1)
    def _finalize():
        o_ref[...] = acc_ref[...].astype(o_ref.dtype)


def perm_equi1_mean(x, w, b, *, use_bf16_matmul=False):
    """x: (B, N, D), w: (D, O) (= W_torch.T), b: (O,) -> (B, N, O)."""
    B, N, D = x.shape
    Dw, O = w.shape
    assert Dw == D and b.shape == (O,)
    M = B * N
    out_dtype = x.dtype

    # Pad only the small weight/bias along O (lane-dense MXU output). x is left
    # untouched in HBM (full-extent K block handles D not multiple of 128).
    Op = _round_up(O, 128)
    w_p = jnp.pad(w, ((0, 0), (0, Op - O))) if Op != O else w
    b_p = jnp.pad(b, (0, Op - O)) if Op != O else b

    # Per-batch correction c_b = bias - (mean_n x_b) @ W  -> (B, Op) in f32.
    # Tiny (B x D) @ (D x Op) matmul; uses the true set size N for the mean.
    mean_x = jnp.mean(x.astype(jnp.float32), axis=1)
    corr = b_p.astype(jnp.float32)[None, :] - jnp.dot(
        mean_x, w_p.astype(jnp.float32), preferred_element_type=jnp.float32)

    # Row -> batch one-hot so the per-batch correction is applied per M-row by
    # the MXU (works for any N / tile alignment).
    B8 = max(8, _round_up(B, 8))                 # sublane-aligned contraction
    corr8 = jnp.pad(corr, ((0, B8 - B), (0, 0)))
    batch_of_row = jnp.arange(M, dtype=jnp.int32) // N
    onehot = (batch_of_row[:, None]
              == jnp.arange(B8, dtype=jnp.int32)[None, :]).astype(jnp.float32)

    x_flat = x.reshape(M, D)                     # free (contiguous) reshape
    if use_bf16_matmul:                          # optional on v6e/v7x
        x_flat = x_flat.astype(jnp.bfloat16)
        w_p = w_p.astype(jnp.bfloat16)

    xbytes = jnp.dtype(x_flat.dtype).itemsize
    wbytes = jnp.dtype(w_p.dtype).itemsize
    obytes = jnp.dtype(out_dtype).itemsize
    use_acc = out_dtype != jnp.float32

    capacity = _vmem_capacity_bytes()
    budget = (capacity * 3) // 4                 # ~96 MiB v5e/v6e, ~48 MiB v7x
    tm, tk, to = _select_tiles(M, D, Op, B8, xbytes, wbytes, obytes, budget,
                               use_acc)
    nm, no, nk = pl.cdiv(M, tm), Op // to, D // tk
    vmem_limit = int(min(capacity - (4 << 20),
                         max(budget,
                             _vmem_estimate(tm, tk, to, B8, xbytes, wbytes,
                                            obytes, use_acc) + (4 << 20))))

    kernel = _pe1_kernel_cast if use_acc else _pe1_kernel_inplace
    scratch = [pltpu.VMEM((tm, to), jnp.float32)] if use_acc else []

    out = pl.pallas_call(
        kernel,
        out_shape=jax.ShapeDtypeStruct((M, Op), out_dtype),
        grid_spec=pltpu.PrefetchScalarGridSpec(
            num_scalar_prefetch=0,
            grid=(nm, no, nk),                   # reduction axis (K) last
            in_specs=[
                pl.BlockSpec((tm, tk), lambda mi, oi, ki: (mi, ki)),
                # When nk == no == 1 (typical Deep Sets dims) this index map is
                # constant -> W is DMA'd once and stays VMEM-resident.
                pl.BlockSpec((tk, to), lambda mi, oi, ki: (ki, oi)),
                pl.BlockSpec((tm, B8), lambda mi, oi, ki: (mi, 0)),
                pl.BlockSpec((B8, to), lambda mi, oi, ki: (0, oi)),
            ],
            out_specs=pl.BlockSpec((tm, to), lambda mi, oi, ki: (mi, oi)),
            scratch_shapes=scratch,
        ),
        compiler_params=pltpu.CompilerParams(
            dimension_semantics=("parallel", "parallel", "arbitrary"),
            vmem_limit_bytes=vmem_limit,
        ),
    )(x_flat, w_p, onehot, corr8)

    out = out.reshape(B, N, Op)
    # TODO(synk): for tiny out_dim the padded output columns + this slice cost
    # extra HBM bytes; a consumer-fused slice or masked final store would avoid it.
    return out[..., :O] if Op != O else out


if __name__ == "__main__":
    # Small shapes consistent with the module: batch=2, set size=8,
    # in_dim=32, out_dim=16.
    B, N, IN_DIM, OUT_DIM = 2, 8, 32, 16

    key = jax.random.PRNGKey(0)
    kx, kw, kb = jax.random.split(key, 3)

    x = jax.random.normal(kx, (B, N, IN_DIM), dtype=jnp.float32)

    # Deterministic init mimicking nn.Linear's uniform(-1/sqrt(in), 1/sqrt(in)).
    bound = 1.0 / (IN_DIM ** 0.5)
    w = jax.random.uniform(kw, (IN_DIM, OUT_DIM), dtype=jnp.float32,
                           minval=-bound, maxval=bound)   # = W_torch.T
    b = jax.random.uniform(kb, (OUT_DIM,), dtype=jnp.float32,
                           minval=-bound, maxval=bound)

    out = jax.block_until_ready(perm_equi1_mean(x, w, b))

    # Pure-JAX reference check of the forward semantics.
    xm = jnp.mean(x, axis=1, keepdims=True)
    ref = jnp.einsum("bnd,do->bno", x - xm, w) + b
    assert out.shape == (B, N, OUT_DIM)
    assert jnp.allclose(out, ref, atol=1e-5, rtol=1e-5), "mismatch vs reference"

    print("KERNEL_OK")
</pallas_src>

<mosaic_0001>
module attributes {stable_mosaic.version = 11 : i64} {
  func.func @_pe1_kernel_inplace(%arg0: i32, %arg1: i32, %arg2: i32, %arg3: memref<16x32xf32, #tpu.memory_space<vmem>>, %arg4: memref<32x128xf32, #tpu.memory_space<vmem>>, %arg5: memref<16x8xf32, #tpu.memory_space<vmem>>, %arg6: memref<8x128xf32, #tpu.memory_space<vmem>>, %arg7: memref<16x128xf32, #tpu.memory_space<vmem>>) attributes {dimension_semantics = [#tpu.dimension_semantics<parallel>, #tpu.dimension_semantics<parallel>, #tpu.dimension_semantics<arbitrary>], iteration_bounds = array<i64: 1, 1, 1>, scalar_prefetch = 0 : i64, scratch_operands = 0 : i64, tpu.core_type = #tpu.core_type<tc>, window_params = [{transform_indices = @transform_0, window_bounds = array<i64: 16, 32>}, {transform_indices = @transform_1, window_bounds = array<i64: 32, 128>}, {transform_indices = @transform_2, window_bounds = array<i64: 16, 8>}, {transform_indices = @transform_3, window_bounds = array<i64: 8, 128>}, {transform_indices = @transform_4, window_bounds = array<i64: 16, 128>}]} {
    %c0_i32 = arith.constant 0 : i32
    %0 = arith.cmpi eq, %arg2, %c0_i32 : i32
    %1 = arith.extui %0 : i1 to i32
    %c0_i32_0 = arith.constant 0 : i32
    %2 = arith.cmpi ne, %1, %c0_i32_0 : i32
    scf.if %2 {
      %c0_8 = arith.constant 0 : index
      %c0_9 = arith.constant 0 : index
      %9 = vector.load %arg5[%c0_8, %c0_9] : memref<16x8xf32, #tpu.memory_space<vmem>>, vector<16x8xf32>
      %c0_10 = arith.constant 0 : index
      %c0_11 = arith.constant 0 : index
      %10 = vector.load %arg6[%c0_10, %c0_11] : memref<8x128xf32, #tpu.memory_space<vmem>>, vector<8x128xf32>
      %cst_12 = arith.constant dense<0.000000e+00> : vector<16x128xf32>
      %11 = tpu.matmul %9, %10, %cst_12 {dimension_numbers = #tpu.dot_dimension_numbers<[1], [0], [0], [1], [0, 0, 1, 1], [], []>} : vector<16x8xf32>, vector<8x128xf32>, vector<16x128xf32> -> vector<16x128xf32>
      %c0_13 = arith.constant 0 : index
      %c0_14 = arith.constant 0 : index
      %12 = vector.load %arg7[%c0_13, %c0_14] : memref<16x128xf32, #tpu.memory_space<vmem>>, vector<16x128xf32>
      tpu.vector_store %arg7[%c0_13, %c0_14], %11 {strides = array<i32>} : memref<16x128xf32, #tpu.memory_space<vmem>>, vector<16x128xf32>,
    } else {
    }
    %c0 = arith.constant 0 : index
    %c0_1 = arith.constant 0 : index
    %3 = vector.load %arg7[%c0, %c0_1] : memref<16x128xf32, #tpu.memory_space<vmem>>, vector<16x128xf32>
    %c0_2 = arith.constant 0 : index
    %c0_3 = arith.constant 0 : index
    %4 = vector.load %arg3[%c0_2, %c0_3] : memref<16x32xf32, #tpu.memory_space<vmem>>, vector<16x32xf32>
    %c0_4 = arith.constant 0 : index
    %c0_5 = arith.constant 0 : index
    %5 = vector.load %arg4[%c0_4, %c0_5] : memref<32x128xf32, #tpu.memory_space<vmem>>, vector<32x128xf32>
    %cst = arith.constant dense<0.000000e+00> : vector<16x128xf32>
    %6 = tpu.matmul %4, %5, %cst {dimension_numbers = #tpu.dot_dimension_numbers<[1], [0], [0], [1], [0, 0, 1, 1], [], []>} : vector<16x32xf32>, vector<32x128xf32>, vector<16x128xf32> -> vector<16x128xf32>
    %7 = arith.addf %3, %6 : vector<16x128xf32>
    %c0_6 = arith.constant 0 : index
    %c0_7 = arith.constant 0 : index
    %8 = vector.load %arg7[%c0_6, %c0_7] : memref<16x128xf32, #tpu.memory_space<vmem>>, vector<16x128xf32>
    tpu.vector_store %arg7[%c0_6, %c0_7], %7 {strides = array<i32>} : memref<16x128xf32, #tpu.memory_space<vmem>>, vector<16x128xf32>,
    return
  }
  func.func @transform_0(%arg0: i32, %arg1: i32, %arg2: i32) -> (i32, i32) {
    %c0_i32 = arith.constant 0 : i32
    return %arg0, %arg2 : i32, i32
  }
  func.func @transform_1(%arg0: i32, %arg1: i32, %arg2: i32) -> (i32, i32) {
    %c0_i32 = arith.constant 0 : i32
    return %arg2, %arg1 : i32, i32
  }
  func.func @transform_2(%arg0: i32, %arg1: i32, %arg2: i32) -> (i32, i32) {
    %c0_i32 = arith.constant 0 : i32
    %c0_i32_0 = arith.constant 0 : i32
    return %arg0, %c0_i32 : i32, i32
  }
  func.func @transform_3(%arg0: i32, %arg1: i32, %arg2: i32) -> (i32, i32) {
    %c0_i32 = arith.constant 0 : i32
    %c0_i32_0 = arith.constant 0 : i32
    return %c0_i32, %arg1 : i32, i32
  }
  func.func @transform_4(%arg0: i32, %arg1: i32, %arg2: i32) -> (i32, i32) {
    %c0_i32 = arith.constant 0 : i32
    return %arg0, %arg1 : i32, i32
  }
}

</mosaic_0001>

<bundles_post_ra>
// kernel: tpu_custom_call.1
= control target key start
LH: loop header
LB: loop body
LE: loop exit
PB: predicated region body
PF: predicated region fallthrough
CT: control target
= control target key end

     0   :  { %9 = vsyncpa [#allocation3], 0  ;;  %s405_s0 = inlined_call_operand.vmem [shape: f32[16,32], index: 0, kind: input, shape index: {}]   ;;  %s406_s1 = inlined_call_operand.hbm [shape: f32[32,128], index: 1, kind: input, shape index: {}]   ;;  %s407_s2 = inlined_call_operand.vmem [shape: f32[16,8], index: 2, kind: input, shape index: {}]   ;;  %s408_s3 = inlined_call_operand.vmem [shape: f32[8,128], index: 3, kind: input, shape index: {}]   ;;  %s409_s4 = inlined_call_operand.hbm [shape: f32[16,128], index: 4, kind: output, shape index: {}]  }
   0x1   :  { %10 = vsyncpa [#allocation4], 0  ;;  %s329_s15 = smov [#allocation2]   ;;  %s281_s19 = scalar_lea.hbm %s406_s1, 512 }
   0x2   :  { %s18_s16 = sshll.u32 %s329_s15, 4  ;;  %p282_p0 = scmp.ne.s32.totalorder %s406_s1, %s281_s19  ;;  %s19_s16 = int_to_ptr.vmem [resolvable:$true] %s18_s16 }
   0x3   :  { %p285_p1 = scmp.lt.u32.totalorder %s281_s19, %s406_s1 }
   0x5   :  { %p287_p2 = pnand %p285_p1, %p282_p0 }
   0x7   :  { %290 = shalt.err (!%p287_p2)
}
   0x8   :  { %s291_s24 = scalar_lea.vmem %s19_s16, 512  ;;  %p296_p4 = scmp.lt.s32.totalorder %s19_s16, %s19_s16 }
   0x9   :  { %p292_p3 = scmp.ne.s32.totalorder %s19_s16, %s291_s24  ;;  %p297_p5 = scmp.lt.s32.totalorder %s291_s24, %s291_s24 }
   0xb   :  { %p298_p6 = por %p297_p5, %p296_p4 }
   0xd   :  { %p299_p7 = pnand %p298_p6, %p292_p3 }
   0xf   :  { %302 = shalt.err (!%p299_p7)
}
  0x10   :  { %s330_s25 = smov 128   ;;  %s331_s26 = smov 8  }
  0x11   :  { %24 = dma.hbm_to_vmem [thread:$0]  %s406_s1, 512, %s19_s16, [#allocation3], %s330_s25, %s330_s25, %s331_s26  }
  0x12   :  { %325 = dma.done.wait [#allocation3], 512  }
  0x13   :  { %326 = vsyncadd [#allocation3], 4294966784  ;;  %vm39_vm0 = vcmask 64512   ;;  %v38_v0 = vld [vmem:[%s408_s3] sm:$0xff]  ;;  %v37_v2 = vld [vmem:[%s407_s2 + $0x8] sm:$0xff]  ;;  %vm131_vm1 = vcmask 261120  }
  0x14   :  { %v36_v1 = vld [vmem:[%s407_s2] sm:$0xff]  ;;  %247 = vmatprep.subr.mxu1 %v38_v0  ;;  %v128_v4 = vld [vmem:[#allocation2 + $0x8] sm:$0xff]  ;;  %v129_v5 = vld [vmem:[#allocation2 + $0x10] sm:$0xff]  ;;  %s332_s10 = smov [#allocation5]  }
  0x15   :  { %249 = vmatprep.mubr.msk.f32.mxu1 %vm39_vm0, %v36_v1  ;;  %v127_v3 = vld [vmem:[#allocation2] sm:$0xff]  ;;  %248 = vmatpush3.msra.mxu1 %v38_v0  ;;  %v130_v7 = vld [vmem:[#allocation2 + $0x18] sm:$0xff]  ;;  %v126_v10 = vld [vmem:[%s405_s0 + $0x8] sm:$0xff]  ;;  %s222_s11 = sshll.u32 %s332_s10, 4  ;;  %s223_s11 = int_to_ptr.vmem [resolvable:$true] %s222_s11 }
  0x16   :  { %v263_v6 = vpack.c.bf16 %v128_v4, %v127_v3  ;;  %v125_v8 = vld [vmem:[%s405_s0] sm:$0xff]  ;;  %250 = vmatmul.mubr.msk.f32.vlgmr.msra.gmra.mrb[0].mxu1 %vm39_vm0, %v37_v2  ;;  %v267_v9 = vpack.c.bf16 %v130_v7, %v129_v5  ;;  %s303_s12 = scalar_lea.vmem %s223_s11, 256  ;;  %p308_p9 = scmp.lt.s32.totalorder %s223_s11, %s223_s11 }
  0x17   :  { %260 = vmatprep.mubr.msk.f32.mxu0 %vm131_vm1, %v125_v8  ;;  %p304_p8 = scmp.ne.s32.totalorder %s223_s11, %s303_s12  ;;  %p309_p10 = scmp.lt.s32.totalorder %s303_s12, %s303_s12 }
  0x18   :  { %264 = vmatprep.subr.bf16.mxu0 %v263_v6 }
  0x19   :  { %266 = vmatpush3.bf16.msra.mxu0 %v263_v6  ;;  %p310_p11 = por %p309_p10, %p308_p9 }
  0x1a   :  { %268 = vmatprep.subr.bf16.mxu0 %v267_v9 }
  0x1b   :  { %p311_p12 = pnand %p310_p11, %p304_p8 }
  0x1d   :  { %270 = vmatpush3.bf16.msra.mxu0 %v267_v9 }
  0x20   :  { %261 = vmatmul.mubr.msk.f32.vlgmr.msra.gmra.mrb[0].mxu0 %vm131_vm1, %v126_v10 }
  0xe9   :  { %v251_v11 = vpop.f32.mrb[0].mxu1 }
  0xea   :  { %v112_v12 = vpop.f32.mrb[1].mxu1 }
  0xf3   :  { %v262_v13 = vpop.f32.mrb[0].mxu0 }
  0xf4   :  { %v273_v14 = vadd.f32 %v262_v13, %v251_v11  ;;  %v204_v15 = vpop.f32.mrb[1].mxu0 }
  0xf5   :  { %v276_v16 = vadd.f32 %v204_v15, %v112_v12 }
  0xf6   :  { %216 = vst [vmem:[#allocation5 + $0x8] sm:$0xff] %v273_v14 }
  0xf7   :  { %215 = vst [vmem:[#allocation5] sm:$0xff] %v276_v16 }
  0xf8   :  { %314 = shalt.err (!%p311_p12)
}
  0xf9   :  { %s315_s14 = scalar_lea.hbm %s409_s4, 256 }
  0xfa   :  { %p316_p13 = scmp.ne.s32.totalorder %s409_s4, %s315_s14  ;;  %p319_p0 = scmp.lt.u32.totalorder %s315_s14, %s409_s4 }
  0xfc   :  { %p321_p1 = pnand %p319_p0, %p316_p13 }
  0xfe   :  { %324 = shalt.err (!%p321_p1)
}
  0xff   :  { %228 = dma.vmem_to_hbm [thread:$0]  %s223_s11, 256, %s409_s4, [#allocation4], %s330_s25, %s330_s25, %s331_s26  }
 0x100   :  { %327 = dma.done.wait [#allocation4], 256  }
 0x101   :  { %328 = vsyncadd [#allocation4], 4294967040 }
 0x102   :  { %232 = vsyncpa [#allocation3], 1 }
 0x103   :  { %233 = vsyncpa [#allocation4], 1 }

</bundles_post_ra>
